<compile_context>
chip_gen: v7x
topology: tpu7x:2x2x1
jax: 0.10.0
libtpu: 0.0.40
codegen_flags: <defaults>
</compile_context>

<pallas_src>
import functools

import jax
import jax.numpy as jnp
from jax.experimental import pallas as pl
from jax.experimental.pallas import tpu as pltpu


# ----------------------------------------------------------------------------
# Kernel: fused Linear + bias + ReLU (dropout = identity in eval mode).
# ----------------------------------------------------------------------------
def _patient_layer_kernel(x_ref, w_ref, b_ref, o_ref):
    y = jnp.dot(x_ref[...], w_ref[...], preferred_element_type=jnp.float32)
    y = y + b_ref[...]                     # (1, out) broadcasts over batch rows
    o_ref[...] = jnp.maximum(y, 0.0).astype(o_ref.dtype)
    # TODO(synk): training-mode dropout (stateful RNG mask + 1/(1-p) scaling) not implemented.
    # TODO(synk): eval-mode BatchNorm1d (batch_norm=True) branch not implemented.


# ----------------------------------------------------------------------------
# Wrapper (jitted; block_batch / grid_min_batch are static tuning knobs).
# ----------------------------------------------------------------------------
@functools.partial(jax.jit, static_argnames=("block_batch", "grid_min_batch"))
def patient_layer_feature_forward(x, w, b, *, block_batch=256, grid_min_batch=8192):
    """x: (batch, in), w: (in, out) [transposed vs. PyTorch], b: (out,)."""
    batch, in_size = x.shape
    out_size = w.shape[1]
    b2 = b.reshape(1, out_size)

    cost = pl.CostEstimate(
        flops=2 * batch * in_size * out_size,
        transcendentals=0,
        bytes_accessed=4 * (x.size + w.size + b2.size + batch * out_size),
    )

    if batch >= grid_min_batch:
        # Batch-tiled path (large batch): weights/bias stay VMEM-resident via a
        # constant index_map; batch axis "parallel" so v7x megacore can shard it.
        # pl.cdiv + ragged last block keeps this path VMEM-safe for ANY batch.
        return pl.pallas_call(
            _patient_layer_kernel,
            out_shape=jax.ShapeDtypeStruct((batch, out_size), jnp.float32),
            grid=(pl.cdiv(batch, block_batch),),
            in_specs=[
                pl.BlockSpec((block_batch, in_size), lambda i: (i, 0)),
                pl.BlockSpec((in_size, out_size), lambda i: (0, 0)),
                pl.BlockSpec((1, out_size), lambda i: (0, 0)),
            ],
            out_specs=pl.BlockSpec((block_batch, out_size), lambda i: (i, 0)),
            compiler_params=pltpu.CompilerParams(
                dimension_semantics=("parallel",),
            ),
            cost_estimate=cost,
        )(x, w, b2)

    # Small/moderate batch: no grid (a grid would be pure per-step overhead on
    # single-TC v5e/v6e); whole arrays resident in VMEM, one DMA each way.
    return pl.pallas_call(
        _patient_layer_kernel,
        out_shape=jax.ShapeDtypeStruct((batch, out_size), jnp.float32),
        in_specs=[
            pl.BlockSpec(memory_space=pltpu.MemorySpace.VMEM),
            pl.BlockSpec(memory_space=pltpu.MemorySpace.VMEM),
            pl.BlockSpec(memory_space=pltpu.MemorySpace.VMEM),
        ],
        out_specs=pl.BlockSpec(memory_space=pltpu.MemorySpace.VMEM),
        cost_estimate=cost,
    )(x, w, b2)


# ----------------------------------------------------------------------------
# Deterministic parameter init mimicking torch.nn.Linear defaults
# (uniform(-1/sqrt(fan_in), 1/sqrt(fan_in))).  W stored as (in, out).
# ----------------------------------------------------------------------------
def init_linear(key, in_size, out_size):
    kw, kb = jax.random.split(key)
    bound = 1.0 / (in_size ** 0.5)
    w = jax.random.uniform(kw, (in_size, out_size), jnp.float32, -bound, bound)
    b = jax.random.uniform(kb, (out_size,), jnp.float32, -bound, bound)
    return w, b


if __name__ == "__main__":
    # PatientLayerFeature(in_size=11, out_size=32, drop=0.5, batch_norm=False)
    in_size, out_size = 11, 32

    key = jax.random.PRNGKey(0)
    key, kp, kx1, kx2 = jax.random.split(key, 4)
    w, b = init_linear(kp, in_size, out_size)

    def reference(x):
        y = jnp.dot(x, w, precision=jax.lax.Precision.HIGHEST) + b
        return jnp.maximum(y, 0.0)          # dropout eval-mode = identity

    # Small-batch path (no grid, whole arrays in VMEM).
    x_small = jax.random.normal(kx1, (8, in_size), jnp.float32)
    y_small = jax.block_until_ready(patient_layer_feature_forward(x_small, w, b))
    assert y_small.shape == (8, out_size)
    assert jnp.allclose(y_small, reference(x_small), atol=1e-4, rtol=1e-4)

    # Grid path with a batch that is NOT a multiple of block_batch
    # (exercises pl.cdiv + ragged last block).
    x_big = jax.random.normal(kx2, (1000, in_size), jnp.float32)
    y_big = jax.block_until_ready(
        patient_layer_feature_forward(x_big, w, b, block_batch=256, grid_min_batch=512)
    )
    assert y_big.shape == (1000, out_size)
    assert jnp.allclose(y_big, reference(x_big), atol=1e-4, rtol=1e-4)

    print("KERNEL_OK")
</pallas_src>

<mosaic_0001>
module attributes {stable_mosaic.version = 11 : i64} {
  func.func @_patient_layer_kernel(%arg0: memref<8x11xf32, #tpu.memory_space<vmem>>, %arg1: memref<11x32xf32, #tpu.memory_space<vmem>>, %arg2: memref<1x32xf32, #tpu.memory_space<vmem>>, %arg3: memref<8x32xf32, #tpu.memory_space<vmem>>) attributes {dimension_semantics = [], scalar_prefetch = 0 : i64, scratch_operands = 0 : i64, tpu.core_type = #tpu.core_type<tc>} {
    %c0 = arith.constant 0 : index
    %c0_0 = arith.constant 0 : index
    %0 = vector.load %arg0[%c0, %c0_0] : memref<8x11xf32, #tpu.memory_space<vmem>>, vector<8x11xf32>
    %c0_1 = arith.constant 0 : index
    %c0_2 = arith.constant 0 : index
    %1 = vector.load %arg1[%c0_1, %c0_2] : memref<11x32xf32, #tpu.memory_space<vmem>>, vector<11x32xf32>
    %cst = arith.constant dense<0.000000e+00> : vector<8x32xf32>
    %2 = tpu.matmul %0, %1, %cst {dimension_numbers = #tpu.dot_dimension_numbers<[1], [0], [0], [1], [0, 0, 1, 1], [], []>} : vector<8x11xf32>, vector<11x32xf32>, vector<8x32xf32> -> vector<8x32xf32>
    %c0_3 = arith.constant 0 : index
    %c0_4 = arith.constant 0 : index
    %3 = vector.load %arg2[%c0_3, %c0_4] : memref<1x32xf32, #tpu.memory_space<vmem>>, vector<1x32xf32>
    %4 = vector.broadcast %3 : vector<1x32xf32> to vector<8x32xf32>
    %5 = arith.addf %2, %4 : vector<8x32xf32>
    %cst_5 = arith.constant 0.000000e+00 : f32
    %6 = vector.broadcast %cst_5 : f32 to vector<8x32xf32>
    %7 = arith.maximumf %5, %6 : vector<8x32xf32>
    %c0_6 = arith.constant 0 : index
    %c0_7 = arith.constant 0 : index
    %8 = vector.load %arg3[%c0_6, %c0_7] : memref<8x32xf32, #tpu.memory_space<vmem>>, vector<8x32xf32>
    tpu.vector_store %arg3[%c0_6, %c0_7], %7 {strides = array<i32>} : memref<8x32xf32, #tpu.memory_space<vmem>>, vector<8x32xf32>,
    return
  }
}

</mosaic_0001>

<bundles_post_ra>
// kernel: patient_layer_feature_forward.1
= control target key start
LH: loop header
LB: loop body
LE: loop exit
PB: predicated region body
PF: predicated region fallthrough
CT: control target
= control target key end

     0   :  { %8 = vsyncpa [#allocation3], 0  ;;  %s321_s0 = inlined_call_operand.hbm [shape: f32[8,11], index: 0, kind: input, shape index: {}]   ;;  %s322_s1 = inlined_call_operand.hbm [shape: f32[11,32], index: 1, kind: input, shape index: {}]   ;;  %s323_s2 = inlined_call_operand.vmem [shape: f32[1,32], index: 2, kind: input, shape index: {}]   ;;  %s324_s3 = inlined_call_operand.hbm [shape: f32[8,32], index: 3, kind: output, shape index: {}]  }
   0x1   :  { %9 = vsyncpa [#allocation6], 0 }
   0x2   :  { %10 = vsyncpa [#allocation4], 0  ;;  %s246_s12 = smov [#allocation2]   ;;  %s247_s14 = smov [#allocation5]  }
   0x3   :  { %s17_s13 = sshll.u32 %s246_s12, 4  ;;  %s26_s15 = sshll.u32 %s247_s14, 4  ;;  %s18_s13 = int_to_ptr.vmem [resolvable:$true] %s17_s13  ;;  %s275_s15 = int_to_ptr.vmem [resolvable:$true] %s26_s15 }
   0x4   :  { %s174_s18 = scalar_lea.hbm %s321_s0, 128 }
   0x5   :  { %p175_p0 = scmp.ne.s32.totalorder %s321_s0, %s174_s18  ;;  %p178_p1 = scmp.lt.u32.totalorder %s174_s18, %s321_s0 }
   0x7   :  { %p180_p2 = pnand %p178_p1, %p175_p0 }
   0x9   :  { %183 = shalt.err (!%p180_p2)
}
   0xa   :  { %s184_s23 = scalar_lea.vmem %s18_s13, 128  ;;  %p189_p4 = scmp.lt.s32.totalorder %s18_s13, %s18_s13 }
   0xb   :  { %p185_p3 = scmp.ne.s32.totalorder %s18_s13, %s184_s23  ;;  %p190_p5 = scmp.lt.s32.totalorder %s184_s23, %s184_s23 }
   0xd   :  { %p191_p6 = por %p190_p5, %p189_p4 }
   0xf   :  { %p192_p7 = pnand %p191_p6, %p185_p3 }
  0x11   :  { %195 = shalt.err (!%p192_p7)
}
  0x12   :  { %20 = dma.hbm_to_vmem [thread:$0]  %s321_s0, 128, %s18_s13, [#allocation3]  }
  0x13   :  { %s196_s28 = scalar_lea.hbm %s322_s1, 256 }
  0x14   :  { %p197_p8 = scmp.ne.s32.totalorder %s322_s1, %s196_s28  ;;  %p200_p9 = scmp.lt.u32.totalorder %s196_s28, %s322_s1 }
  0x16   :  { %p202_p10 = pnand %p200_p9, %p197_p8 }
  0x18   :  { %205 = shalt.err (!%p202_p10)
}
  0x19   :  { %s206_s6 = scalar_lea.vmem %s275_s15, 256  ;;  %p211_p12 = scmp.lt.s32.totalorder %s275_s15, %s275_s15 }
  0x1a   :  { %p207_p11 = scmp.ne.s32.totalorder %s275_s15, %s206_s6  ;;  %p212_p13 = scmp.lt.s32.totalorder %s206_s6, %s206_s6 }
  0x1c   :  { %p213_p0 = por %p212_p13, %p211_p12 }
  0x1e   :  { %p214_p1 = pnand %p213_p0, %p207_p11 }
  0x20   :  { %217 = shalt.err (!%p214_p1)
}
  0x21   :  { %s248_s0 = smov 128   ;;  %s249_s7 = smov 8  }
  0x22   :  { %32 = dma.hbm_to_vmem [thread:$0]  %s322_s1, 256, %s275_s15, [#allocation6], %s248_s0, %s248_s0, %s249_s7  }
  0x23   :  { %240 = dma.done.wait [#allocation3], 128  }
  0x24   :  { %241 = vsyncadd [#allocation3], 4294967168 }
  0x25   :  { %242 = dma.done.wait [#allocation6], 256  }
  0x26   :  { %243 = vsyncadd [#allocation6], 4294967040  ;;  %v250_v0 = vmov 0.0|0.0   ;;  %vm251_vm0 = vmmov 0   ;;  %v252_v1 = vmov 0.0   ;;  %vm55_vm1 = vcmask 1042432  }
  0x27   :  { %161 = vmatprep.subr.bf16.mxu0 %v250_v0  ;;  %158 = vmatprep.mubr.msk.f32.mxu0 %vm251_vm0, %v252_v1  ;;  %v42_v2 = vld [vmem:[#allocation5] sm:$0xff]  ;;  %v43_v3 = vld [vmem:[#allocation5 + $0x8] sm:$0x7]  ;;  %vm253_vm2 = vmmov 1   ;;  %v41_v5 = vld [vmem:[#allocation2] sm:$0xff]  ;;  %vm51_vm4 = vcmask 89088  }
  0x28   :  { %vm163_vm3 = vmpackc.low %vm55_vm1, %vm253_vm2  ;;  %v162_v4 = vpack.c.bf16 %v43_v3, %v42_v2  ;;  %v148_v6 = vld [vmem:[%s323_s2] ss:$0 sm:$0xff]  ;;  %s254_s11 = smov [#allocation7]   ;;  %vm130_vm5 = vcmask 261120  }
  0x29   :  { %s138_s12 = sshll.u32 %s254_s11, 4  ;;  %s139_s12 = int_to_ptr.vmem [resolvable:$true] %s138_s12 }
  0x2a   :  { %164 = vmatpush3.bf16.msk.msra.mxu0 %vm163_vm3, %v162_v4  ;;  %s218_s13 = scalar_lea.vmem %s139_s12, 128  ;;  %p223_p3 = scmp.lt.s32.totalorder %s139_s12, %s139_s12 }
  0x2b   :  { %p219_p2 = scmp.ne.s32.totalorder %s139_s12, %s218_s13  ;;  %p224_p4 = scmp.lt.s32.totalorder %s218_s13, %s218_s13 }
  0x2d   :  { %159 = vmatmul.mubr.msk.f32.vlgmr.msra.gmra.mrb[0].mxu0 %vm51_vm4, %v41_v5  ;;  %p225_p5 = por %p224_p4, %p223_p3 }
  0x2f   :  { %p226_p6 = pnand %p225_p5, %p219_p2 }
 0x100   :  { %v125_v7 = vpop.f32.mrb[0].mxu0 }
 0x101   :  { %v126_v8 = vadd.f32 %v148_v6, %v125_v7  ;;  %v160_v9 = vpop.f32.mrb[1].mxu0 }
 0x103   :  { %v129_v10 = vmax.f32 %v126_v8, 0.0 }
 0x105   :  { %131 = vst.msk [vmem:[#allocation7] sm:$0xff] %vm130_vm5, %v129_v10 }
 0x106   :  { %229 = shalt.err (!%p226_p6)
}
 0x107   :  { %s230_s2 = scalar_lea.hbm %s324_s3, 128 }
 0x108   :  { %p231_p7 = scmp.ne.s32.totalorder %s324_s3, %s230_s2  ;;  %p234_p8 = scmp.lt.u32.totalorder %s230_s2, %s324_s3 }
 0x10a   :  { %p236_p9 = pnand %p234_p8, %p231_p7 }
 0x10c   :  { %239 = shalt.err (!%p236_p9)
}
 0x10d   :  { %141 = dma.vmem_to_hbm [thread:$0]  %s139_s12, 128, %s324_s3, [#allocation4]  }
 0x10e   :  { %244 = dma.done.wait [#allocation4], 128  }
 0x10f   :  { %245 = vsyncadd [#allocation4], 4294967168 }
 0x110   :  { %145 = vsyncpa [#allocation3], 1 }
 0x111   :  { %146 = vsyncpa [#allocation6], 1 }
 0x112   :  { %147 = vsyncpa [#allocation4], 1 }

</bundles_post_ra>
